<compile_context>
chip_gen: v7x
topology: tpu7x:2x2x1
jax: 0.10.0
libtpu: 0.0.40
codegen_flags: <defaults>
</compile_context>

<pallas_src>
import jax
import jax.numpy as jnp
from jax.experimental import pallas as pl
from jax.experimental.pallas import tpu as pltpu

_BN_EPS = 1e-5
_SMALL_C_MAX = 8            # <= this: 1x1 conv on the VPU; above: MXU
_TARGET_BYTES = 1 << 20     # ~1 MiB f32 slab per grid step (per array)
_MAX_L_TILE = 32768         # lane-dim cap
_MAX_NB = 8                 # max batch rows packed per block (static unroll bound)
_VMEM_LIMIT = 48 * 1024 * 1024


# ----------------------------------------------------------------------------- compute
def _conv1x1(w, x):
    """1x1 Conv1d in channels-on-sublane layout.

    w: (C_out, C_in) float32   (PyTorch Conv1d weight with kernel dim squeezed)
    x: (C_in, L_tile) float32
    returns y = w @ x, shape (C_out, L_tile)
    """
    c_out, c_in = w.shape
    if c_in <= _SMALL_C_MAX:
        # Tiny channel count only: VPU broadcast-FMAs.  Use independent accumulator
        # chains so the 4 VALU slots are not serialized on a single acc dependency.
        n_acc = min(4, c_in)
        parts = []
        for a in range(n_acc):
            acc = w[:, a:a + 1] * x[a:a + 1, :]
            for k in range(a + n_acc, c_in, n_acc):
                acc = acc + w[:, k:k + 1] * x[k:k + 1, :]
            parts.append(acc)
        while len(parts) > 1:           # tree-sum the partials
            nxt = [parts[i] + parts[i + 1] for i in range(0, len(parts) - 1, 2)]
            if len(parts) % 2:
                nxt.append(parts[-1])
            parts = nxt
        return parts[0]
    # Everything else goes to the MXU (separate VLIW slot from the VPU work).
    # TODO(synk): for very large C (>~2k), K-tile the weights / consider bf16 weights
    # with f32 accumulation to respect VMEM and MXU-width alignment.
    return jnp.dot(w, x, preferred_element_type=jnp.float32)


# ----------------------------------------------------------------------------- kernels
def _make_stats1_kernel(nb):
    """Accumulate per-channel sum / sum-of-squares of y1 = W1 @ x (per leading grid idx)."""
    def kernel(x_ref, w1_ref, sum_ref, sq_ref):
        @pl.when(pl.program_id(1) == 0)
        def _():
            sum_ref[...] = jnp.zeros_like(sum_ref)
            sq_ref[...] = jnp.zeros_like(sq_ref)

        w1 = w1_ref[...]
        psum = None
        psq = None
        for b in range(nb):                       # static unroll, nb <= _MAX_NB
            x = x_ref[b].astype(jnp.float32)      # (C, lt)
            y1 = _conv1x1(w1, x)                  # (C, lt); padded cols are exactly 0
            s = jnp.sum(y1, axis=1, keepdims=True)
            q = jnp.sum(y1 * y1, axis=1, keepdims=True)
            psum = s if psum is None else psum + s
            psq = q if psq is None else psq + q
        sum_ref[...] += psum
        sq_ref[...] += psq
    return kernel


def _make_stats2_kernel(nb, lt, L, C, padded):
    """Accumulate per-channel sum / sumsq of y2 = W2 @ relu(BN1(W1 @ x))."""
    def kernel(x_ref, w1_ref, s1_ref, t1_ref, w2_ref, sum_ref, sq_ref):
        @pl.when(pl.program_id(1) == 0)
        def _():
            sum_ref[...] = jnp.zeros_like(sum_ref)
            sq_ref[...] = jnp.zeros_like(sq_ref)

        w1 = w1_ref[...]
        w2 = w2_ref[...]
        s1 = s1_ref[...]
        t1 = t1_ref[...]
        if padded:
            col = pl.program_id(1) * lt + jax.lax.broadcasted_iota(jnp.int32, (C, lt), 1)
            valid = (col < L).astype(jnp.float32)
        psum = None
        psq = None
        for b in range(nb):
            x = x_ref[b].astype(jnp.float32)
            y1 = _conv1x1(w1, x)
            z = jnp.maximum(y1 * s1 + t1, 0.0)    # folded BN1 + ReLU
            if padded:
                z = z * valid                     # padded cols must not pollute BN2 stats
            y2 = _conv1x1(w2, z)
            s = jnp.sum(y2, axis=1, keepdims=True)
            q = jnp.sum(y2 * y2, axis=1, keepdims=True)
            psum = s if psum is None else psum + s
            psq = q if psq is None else psq + q
        sum_ref[...] += psum
        sq_ref[...] += psq
    return kernel


def _make_apply_kernel(nb):
    """out = x + relu(BN2(W2 @ relu(BN1(W1 @ x)))), BN folded to per-channel scale/shift."""
    def kernel(x_ref, w1_ref, s1_ref, t1_ref, w2_ref, s2_ref, t2_ref, o_ref):
        w1 = w1_ref[...]
        w2 = w2_ref[...]
        s1 = s1_ref[...]
        t1 = t1_ref[...]
        s2 = s2_ref[...]
        t2 = t2_ref[...]
        for b in range(nb):
            x = x_ref[b].astype(jnp.float32)
            y1 = _conv1x1(w1, x)
            z = jnp.maximum(y1 * s1 + t1, 0.0)
            y2 = _conv1x1(w2, z)
            h = jnp.maximum(y2 * s2 + t2, 0.0)
            o_ref[b] = (x + h).astype(o_ref.dtype)
    return kernel


# ----------------------------------------------------------------------------- tiling
def _choose_tiles(N, C, L):
    """Pick (nb, lt, Lp): batch rows per block, lane tile, padded L."""
    row_bytes = 4 * C
    lt_cap = max(128, min(_MAX_L_TILE, (_TARGET_BYTES // row_bytes) // 128 * 128))
    if L <= lt_cap:
        lt, Lp = L, L                              # whole-L block (full-extent lane dim)
    else:
        lt = 0
        for cand in range(lt_cap, 127, -128):      # prefer a 128-multiple divisor of L
            if L % cand == 0:
                lt = cand
                break
        if lt:
            Lp = L
        else:
            lt = lt_cap                            # pad + mask irregular L
            Lp = -(-L // lt) * lt
    want_nb = min(_MAX_NB, max(1, _TARGET_BYTES // (row_bytes * lt)))
    nb = 1
    for d in range(1, min(N, want_nb) + 1):
        if N % d == 0:
            nb = d
    return nb, lt, Lp


def _fold_bn(sum_, sumsq, gamma, beta, m):
    """Fold training-mode BatchNorm1d into y -> y * scale + shift (biased variance)."""
    # TODO(synk): one-pass E[y^2]-E[y]^2 in f32 can cancel when |mean| >> std; switch to
    # per-tile-centered / Welford-merged stats if that regime matters.
    mean = sum_ / m
    var = jnp.maximum(sumsq / m - mean * mean, 0.0)
    scale = gamma * jax.lax.rsqrt(var + _BN_EPS)
    shift = beta - mean * scale
    return scale, shift


# ----------------------------------------------------------------------------- wrapper
@jax.jit
def residue_module_forward(x, params):
    """x: (N, C, L) float32, NCW layout (PyTorch Conv1d).  Returns (N, C, L)."""
    N, C, L = x.shape
    w1, g1, be1, w2, g2, be2 = params

    nb, lt, Lp = _choose_tiles(N, C, L)
    padded = Lp != L
    xp = jnp.pad(x, ((0, 0), (0, 0), (0, Lp - L))) if padded else x

    g0 = N // nb
    grid = (g0, Lp // lt)
    m = N * L                                      # real element count per channel

    x_spec = pl.BlockSpec((nb, C, lt), lambda n, t: (n, 0, t))
    w_spec = pl.BlockSpec((C, C), lambda n, t: (0, 0))
    v_spec = pl.BlockSpec((C, 1), lambda n, t: (0, 0))
    acc_spec = pl.BlockSpec((1, C, 1), lambda n, t: (n, 0, 0))   # resident across t
    acc_shape = jax.ShapeDtypeStruct((g0, C, 1), jnp.float32)

    stats_params = pltpu.CompilerParams(
        dimension_semantics=("parallel", "arbitrary"),   # per-n accumulators, t reduced
        vmem_limit_bytes=_VMEM_LIMIT)
    apply_params = pltpu.CompilerParams(
        dimension_semantics=("parallel", "parallel"),    # fully independent output tiles
        vmem_limit_bytes=_VMEM_LIMIT)

    cols = N * Lp
    conv_f = 2 * C * C
    xb = N * C * Lp * 4
    wb = C * C * 4
    vb = C * 4
    ce1 = pl.CostEstimate(flops=cols * (conv_f + 4 * C), transcendentals=0,
                          bytes_accessed=xb + wb + 2 * g0 * C * 4)
    ce2 = pl.CostEstimate(flops=cols * (2 * conv_f + 8 * C), transcendentals=0,
                          bytes_accessed=xb + 2 * wb + 2 * vb + 2 * g0 * C * 4)
    ce3 = pl.CostEstimate(flops=cols * (2 * conv_f + 8 * C), transcendentals=0,
                          bytes_accessed=2 * xb + 2 * wb + 4 * vb)

    # Phase 1: global BN1 batch statistics of y1 = W1 @ x
    sum1, sq1 = pl.pallas_call(
        _make_stats1_kernel(nb),
        grid=grid,
        in_specs=[x_spec, w_spec],
        out_specs=(acc_spec, acc_spec),
        out_shape=(acc_shape, acc_shape),
        compiler_params=stats_params,
        cost_estimate=ce1,
    )(xp, w1)
    scale1, shift1 = _fold_bn(sum1.sum(axis=0), sq1.sum(axis=0), g1, be1, m)

    # Phase 2: global BN2 batch statistics of y2 = W2 @ relu(BN1(y1))
    sum2, sq2 = pl.pallas_call(
        _make_stats2_kernel(nb, lt, L, C, padded),
        grid=grid,
        in_specs=[x_spec, w_spec, v_spec, v_spec, w_spec],
        out_specs=(acc_spec, acc_spec),
        out_shape=(acc_shape, acc_shape),
        compiler_params=stats_params,
        cost_estimate=ce2,
    )(xp, w1, scale1, shift1, w2)
    scale2, shift2 = _fold_bn(sum2.sum(axis=0), sq2.sum(axis=0), g2, be2, m)

    # Phase 3: apply both conv+BN+ReLU stages and the residual add, tile by tile
    out = pl.pallas_call(
        _make_apply_kernel(nb),
        grid=grid,
        in_specs=[x_spec, w_spec, v_spec, v_spec, w_spec, v_spec, v_spec],
        out_specs=pl.BlockSpec((nb, C, lt), lambda n, t: (n, 0, t)),
        out_shape=jax.ShapeDtypeStruct((N, C, Lp), x.dtype),
        compiler_params=apply_params,
        cost_estimate=ce3,
    )(xp, w1, scale1, shift1, w2, scale2, shift2)

    if padded:
        out = out[:, :, :L]
    return out


# ----------------------------------------------------------------------------- setup
def init_params(channel_count, key):
    """Deterministic synthetic parameters matching _ResidueModule(channel_count).

    Conv1d biases are omitted on purpose: a per-channel constant bias is exactly
    cancelled by the following BatchNorm's mean subtraction (training-mode batch
    statistics), so it can never affect the forward output.
    """
    C = channel_count
    ks = jax.random.split(key, 6)
    # torch Conv1d weight is (out_ch, in_ch, 1); kernel dim squeezed -> (C, C)
    w1 = 0.5 * jax.random.normal(ks[0], (C, C), jnp.float32)
    w2 = 0.5 * jax.random.normal(ks[1], (C, C), jnp.float32)
    # BatchNorm affine params, channels-on-sublane layout (C, 1)
    g1 = 1.0 + 0.1 * jax.random.normal(ks[2], (C, 1), jnp.float32)
    be1 = 0.1 * jax.random.normal(ks[3], (C, 1), jnp.float32)
    g2 = 1.0 + 0.1 * jax.random.normal(ks[4], (C, 1), jnp.float32)
    be2 = 0.1 * jax.random.normal(ks[5], (C, 1), jnp.float32)
    return (w1, g1, be1, w2, g2, be2)


def _reference(x, params):
    """Pure-JAX reference (training-mode BN with batch statistics, no conv bias)."""
    w1, g1, be1, w2, g2, be2 = params

    def conv_bn_relu(y_in, w, g, b):
        y = jnp.einsum('oc,ncl->nol', w, y_in)
        mean = y.mean(axis=(0, 2), keepdims=True)
        var = y.var(axis=(0, 2), keepdims=True)
        yhat = (y - mean) / jnp.sqrt(var + _BN_EPS)
        return jnp.maximum(yhat * g[None, :, :] + b[None, :, :], 0.0)

    h = conv_bn_relu(x, w1, g1, be1)
    h = conv_bn_relu(h, w2, g2, be2)
    return x + h


if __name__ == "__main__":
    key = jax.random.PRNGKey(0)
    k_x, k_p = jax.random.split(key)

    N, C, L = 2, 4, 16
    x = jax.random.normal(k_x, (N, C, L), jnp.float32)
    params = init_params(C, k_p)

    out = jax.block_until_ready(residue_module_forward(x, params))

    assert out.shape == (N, C, L) and out.dtype == jnp.float32
    ref = _reference(x, params)
    assert jnp.allclose(out, ref, rtol=2e-3, atol=2e-3)
    print("KERNEL_OK")
</pallas_src>

<mosaic_0001>
module attributes {stable_mosaic.version = 11 : i64} {
  func.func @kernel(%arg0: i32, %arg1: i32, %arg2: memref<2x4x16xf32, #tpu.memory_space<vmem>>, %arg3: memref<4x4xf32, #tpu.memory_space<vmem>>, %arg4: memref<1x4x1xf32, #tpu.memory_space<vmem>>, %arg5: memref<1x4x1xf32, #tpu.memory_space<vmem>>) attributes {dimension_semantics = [#tpu.dimension_semantics<parallel>, #tpu.dimension_semantics<arbitrary>], iteration_bounds = array<i64: 1, 1>, scalar_prefetch = 0 : i64, scratch_operands = 0 : i64, tpu.core_type = #tpu.core_type<tc>, window_params = [{transform_indices = @transform_0, window_bounds = array<i64: 2, 4, 16>}, {pipeline_mode = #tpu.pipeline_mode<synchronous>, transform_indices = @transform_1, window_bounds = array<i64: 4, 4>}, {transform_indices = @transform_2, window_bounds = array<i64: 1, 4, 1>}, {transform_indices = @transform_3, window_bounds = array<i64: 1, 4, 1>}]} {
    %c0_i32 = arith.constant 0 : i32
    %0 = arith.cmpi eq, %arg1, %c0_i32 : i32
    %1 = arith.extui %0 : i1 to i32
    %c0_i32_0 = arith.constant 0 : i32
    %2 = arith.cmpi ne, %1, %c0_i32_0 : i32
    scf.if %2 {
      %cst_22 = arith.constant 0.000000e+00 : f32
      %74 = vector.broadcast %cst_22 : f32 to vector<1x4x1xf32>
      %c0_23 = arith.constant 0 : index
      %c0_24 = arith.constant 0 : index
      %c0_25 = arith.constant 0 : index
      %75 = vector.load %arg4[%c0_23, %c0_24, %c0_25] : memref<1x4x1xf32, #tpu.memory_space<vmem>>, vector<1x4x1xf32>
      tpu.vector_store %arg4[%c0_23, %c0_24, %c0_25], %74 {strides = array<i32>} : memref<1x4x1xf32, #tpu.memory_space<vmem>>, vector<1x4x1xf32>,
      %cst_26 = arith.constant 0.000000e+00 : f32
      %76 = vector.broadcast %cst_26 : f32 to vector<1x4x1xf32>
      %c0_27 = arith.constant 0 : index
      %c0_28 = arith.constant 0 : index
      %c0_29 = arith.constant 0 : index
      %77 = vector.load %arg5[%c0_27, %c0_28, %c0_29] : memref<1x4x1xf32, #tpu.memory_space<vmem>>, vector<1x4x1xf32>
      tpu.vector_store %arg5[%c0_27, %c0_28, %c0_29], %76 {strides = array<i32>} : memref<1x4x1xf32, #tpu.memory_space<vmem>>, vector<1x4x1xf32>,
    } else {
    }
    %c0 = arith.constant 0 : index
    %c0_1 = arith.constant 0 : index
    %3 = vector.load %arg3[%c0, %c0_1] : memref<4x4xf32, #tpu.memory_space<vmem>>, vector<4x4xf32>
    %c0_2 = arith.constant 0 : index
    %c0_3 = arith.constant 0 : index
    %c0_4 = arith.constant 0 : index
    %4 = vector.load %arg2[%c0_2, %c0_3, %c0_4] : memref<2x4x16xf32, #tpu.memory_space<vmem>>, vector<1x4x16xf32>
    %5 = vector.shape_cast %4 : vector<1x4x16xf32> to vector<4x16xf32>
    %6 = vector.extract_strided_slice %3 {offsets = [0, 0], sizes = [4, 1], strides = [1, 1]} : vector<4x4xf32> to vector<4x1xf32>
    %7 = vector.extract_strided_slice %5 {offsets = [0, 0], sizes = [1, 16], strides = [1, 1]} : vector<4x16xf32> to vector<1x16xf32>
    %8 = vector.broadcast %6 : vector<4x1xf32> to vector<4x16xf32>
    %9 = vector.broadcast %7 : vector<1x16xf32> to vector<4x16xf32>
    %10 = arith.mulf %8, %9 : vector<4x16xf32>
    %11 = vector.extract_strided_slice %3 {offsets = [0, 1], sizes = [4, 1], strides = [1, 1]} : vector<4x4xf32> to vector<4x1xf32>
    %12 = vector.extract_strided_slice %5 {offsets = [1, 0], sizes = [1, 16], strides = [1, 1]} : vector<4x16xf32> to vector<1x16xf32>
    %13 = vector.broadcast %11 : vector<4x1xf32> to vector<4x16xf32>
    %14 = vector.broadcast %12 : vector<1x16xf32> to vector<4x16xf32>
    %15 = arith.mulf %13, %14 : vector<4x16xf32>
    %16 = vector.extract_strided_slice %3 {offsets = [0, 2], sizes = [4, 1], strides = [1, 1]} : vector<4x4xf32> to vector<4x1xf32>
    %17 = vector.extract_strided_slice %5 {offsets = [2, 0], sizes = [1, 16], strides = [1, 1]} : vector<4x16xf32> to vector<1x16xf32>
    %18 = vector.broadcast %16 : vector<4x1xf32> to vector<4x16xf32>
    %19 = vector.broadcast %17 : vector<1x16xf32> to vector<4x16xf32>
    %20 = arith.mulf %18, %19 : vector<4x16xf32>
    %21 = vector.extract_strided_slice %3 {offsets = [0, 3], sizes = [4, 1], strides = [1, 1]} : vector<4x4xf32> to vector<4x1xf32>
    %22 = vector.extract_strided_slice %5 {offsets = [3, 0], sizes = [1, 16], strides = [1, 1]} : vector<4x16xf32> to vector<1x16xf32>
    %23 = vector.broadcast %21 : vector<4x1xf32> to vector<4x16xf32>
    %24 = vector.broadcast %22 : vector<1x16xf32> to vector<4x16xf32>
    %25 = arith.mulf %23, %24 : vector<4x16xf32>
    %26 = arith.addf %10, %15 : vector<4x16xf32>
    %27 = arith.addf %20, %25 : vector<4x16xf32>
    %28 = arith.addf %26, %27 : vector<4x16xf32>
    %cst = arith.constant dense<0.000000e+00> : vector<4xf32>
    %29 = vector.multi_reduction <add>, %28, %cst [1] : vector<4x16xf32> to vector<4xf32>
    %30 = vector.shape_cast %29 : vector<4xf32> to vector<4x1xf32>
    %31 = arith.mulf %28, %28 : vector<4x16xf32>
    %cst_5 = arith.constant dense<0.000000e+00> : vector<4xf32>
    %32 = vector.multi_reduction <add>, %31, %cst_5 [1] : vector<4x16xf32> to vector<4xf32>
    %33 = vector.shape_cast %32 : vector<4xf32> to vector<4x1xf32>
    %c1 = arith.constant 1 : index
    %c0_6 = arith.constant 0 : index
    %c0_7 = arith.constant 0 : index
    %34 = vector.load %arg2[%c1, %c0_6, %c0_7] : memref<2x4x16xf32, #tpu.memory_space<vmem>>, vector<1x4x16xf32>
    %35 = vector.shape_cast %34 : vector<1x4x16xf32> to vector<4x16xf32>
    %36 = vector.extract_strided_slice %3 {offsets = [0, 0], sizes = [4, 1], strides = [1, 1]} : vector<4x4xf32> to vector<4x1xf32>
    %37 = vector.extract_strided_slice %35 {offsets = [0, 0], sizes = [1, 16], strides = [1, 1]} : vector<4x16xf32> to vector<1x16xf32>
    %38 = vector.broadcast %36 : vector<4x1xf32> to vector<4x16xf32>
    %39 = vector.broadcast %37 : vector<1x16xf32> to vector<4x16xf32>
    %40 = arith.mulf %38, %39 : vector<4x16xf32>
    %41 = vector.extract_strided_slice %3 {offsets = [0, 1], sizes = [4, 1], strides = [1, 1]} : vector<4x4xf32> to vector<4x1xf32>
    %42 = vector.extract_strided_slice %35 {offsets = [1, 0], sizes = [1, 16], strides = [1, 1]} : vector<4x16xf32> to vector<1x16xf32>
    %43 = vector.broadcast %41 : vector<4x1xf32> to vector<4x16xf32>
    %44 = vector.broadcast %42 : vector<1x16xf32> to vector<4x16xf32>
    %45 = arith.mulf %43, %44 : vector<4x16xf32>
    %46 = vector.extract_strided_slice %3 {offsets = [0, 2], sizes = [4, 1], strides = [1, 1]} : vector<4x4xf32> to vector<4x1xf32>
    %47 = vector.extract_strided_slice %35 {offsets = [2, 0], sizes = [1, 16], strides = [1, 1]} : vector<4x16xf32> to vector<1x16xf32>
    %48 = vector.broadcast %46 : vector<4x1xf32> to vector<4x16xf32>
    %49 = vector.broadcast %47 : vector<1x16xf32> to vector<4x16xf32>
    %50 = arith.mulf %48, %49 : vector<4x16xf32>
    %51 = vector.extract_strided_slice %3 {offsets = [0, 3], sizes = [4, 1], strides = [1, 1]} : vector<4x4xf32> to vector<4x1xf32>
    %52 = vector.extract_strided_slice %35 {offsets = [3, 0], sizes = [1, 16], strides = [1, 1]} : vector<4x16xf32> to vector<1x16xf32>
    %53 = vector.broadcast %51 : vector<4x1xf32> to vector<4x16xf32>
    %54 = vector.broadcast %52 : vector<1x16xf32> to vector<4x16xf32>
    %55 = arith.mulf %53, %54 : vector<4x16xf32>
    %56 = arith.addf %40, %45 : vector<4x16xf32>
    %57 = arith.addf %50, %55 : vector<4x16xf32>
    %58 = arith.addf %56, %57 : vector<4x16xf32>
    %cst_8 = arith.constant dense<0.000000e+00> : vector<4xf32>
    %59 = vector.multi_reduction <add>, %58, %cst_8 [1] : vector<4x16xf32> to vector<4xf32>
    %60 = vector.shape_cast %59 : vector<4xf32> to vector<4x1xf32>
    %61 = arith.mulf %58, %58 : vector<4x16xf32>
    %cst_9 = arith.constant dense<0.000000e+00> : vector<4xf32>
    %62 = vector.multi_reduction <add>, %61, %cst_9 [1] : vector<4x16xf32> to vector<4xf32>
    %63 = vector.shape_cast %62 : vector<4xf32> to vector<4x1xf32>
    %64 = arith.addf %30, %60 : vector<4x1xf32>
    %65 = arith.addf %33, %63 : vector<4x1xf32>
    %c0_10 = arith.constant 0 : index
    %c0_11 = arith.constant 0 : index
    %c0_12 = arith.constant 0 : index
    %66 = vector.load %arg4[%c0_10, %c0_11, %c0_12] : memref<1x4x1xf32, #tpu.memory_space<vmem>>, vector<1x4x1xf32>
    %67 = vector.shape_cast %64 : vector<4x1xf32> to vector<1x4x1xf32>
    %68 = arith.addf %66, %67 : vector<1x4x1xf32>
    %c0_13 = arith.constant 0 : index
    %c0_14 = arith.constant 0 : index
    %c0_15 = arith.constant 0 : index
    %69 = vector.load %arg4[%c0_13, %c0_14, %c0_15] : memref<1x4x1xf32, #tpu.memory_space<vmem>>, vector<1x4x1xf32>
    tpu.vector_store %arg4[%c0_13, %c0_14, %c0_15], %68 {strides = array<i32>} : memref<1x4x1xf32, #tpu.memory_space<vmem>>, vector<1x4x1xf32>,
    %c0_16 = arith.constant 0 : index
    %c0_17 = arith.constant 0 : index
    %c0_18 = arith.constant 0 : index
    %70 = vector.load %arg5[%c0_16, %c0_17, %c0_18] : memref<1x4x1xf32, #tpu.memory_space<vmem>>, vector<1x4x1xf32>
    %71 = vector.shape_cast %65 : vector<4x1xf32> to vector<1x4x1xf32>
    %72 = arith.addf %70, %71 : vector<1x4x1xf32>
    %c0_19 = arith.constant 0 : index
    %c0_20 = arith.constant 0 : index
    %c0_21 = arith.constant 0 : index
    %73 = vector.load %arg5[%c0_19, %c0_20, %c0_21] : memref<1x4x1xf32, #tpu.memory_space<vmem>>, vector<1x4x1xf32>
    tpu.vector_store %arg5[%c0_19, %c0_20, %c0_21], %72 {strides = array<i32>} : memref<1x4x1xf32, #tpu.memory_space<vmem>>, vector<1x4x1xf32>,
    return
  }
  func.func @transform_0(%arg0: i32, %arg1: i32) -> (i32, i32, i32) {
    %c0_i32 = arith.constant 0 : i32
    %c0_i32_0 = arith.constant 0 : i32
    return %arg0, %c0_i32, %arg1 : i32, i32, i32
  }
  func.func @transform_1(%arg0: i32, %arg1: i32) -> (i32, i32) {
    %c0_i32 = arith.constant 0 : i32
    %c0_i32_0 = arith.constant 0 : i32
    %c0_i32_1 = arith.constant 0 : i32
    return %c0_i32, %c0_i32_0 : i32, i32
  }
  func.func @transform_2(%arg0: i32, %arg1: i32) -> (i32, i32, i32) {
    %c0_i32 = arith.constant 0 : i32
    %c0_i32_0 = arith.constant 0 : i32
    %c0_i32_1 = arith.constant 0 : i32
    return %arg0, %c0_i32, %c0_i32_0 : i32, i32, i32
  }
  func.func @transform_3(%arg0: i32, %arg1: i32) -> (i32, i32, i32) {
    %c0_i32 = arith.constant 0 : i32
    %c0_i32_0 = arith.constant 0 : i32
    %c0_i32_1 = arith.constant 0 : i32
    return %arg0, %c0_i32, %c0_i32_0 : i32, i32, i32
  }
}

module attributes {stable_mosaic.version = 11 : i64} {
  func.func @kernel(%arg0: i32, %arg1: i32, %arg2: memref<2x4x16xf32, #tpu.memory_space<vmem>>, %arg3: memref<4x4xf32, #tpu.memory_space<vmem>>, %arg4: memref<4x1xf32, #tpu.memory_space<vmem>>, %arg5: memref<4x1xf32, #tpu.memory_space<vmem>>, %arg6: memref<4x4xf32, #tpu.memory_space<vmem>>, %arg7: memref<4x1xf32, #tpu.memory_space<vmem>>, %arg8: memref<4x1xf32, #tpu.memory_space<vmem>>, %arg9: memref<2x4x16xf32, #tpu.memory_space<vmem>>) attributes {dimension_semantics = [#tpu.dimension_semantics<parallel>, #tpu.dimension_semantics<parallel>], iteration_bounds = array<i64: 1, 1>, scalar_prefetch = 0 : i64, scratch_operands = 0 : i64, tpu.core_type = #tpu.core_type<tc>, window_params = [{transform_indices = @transform_0, window_bounds = array<i64: 2, 4, 16>}, {pipeline_mode = #tpu.pipeline_mode<synchronous>, transform_indices = @transform_1, window_bounds = array<i64: 4, 4>}, {pipeline_mode = #tpu.pipeline_mode<synchronous>, transform_indices = @transform_2, window_bounds = array<i64: 4, 1>}, {pipeline_mode = #tpu.pipeline_mode<synchronous>, transform_indices = @transform_3, window_bounds = array<i64: 4, 1>}, {pipeline_mode = #tpu.pipeline_mode<synchronous>, transform_indices = @transform_4, window_bounds = array<i64: 4, 4>}, {pipeline_mode = #tpu.pipeline_mode<synchronous>, transform_indices = @transform_5, window_bounds = array<i64: 4, 1>}, {pipeline_mode = #tpu.pipeline_mode<synchronous>, transform_indices = @transform_6, window_bounds = array<i64: 4, 1>}, {transform_indices = @transform_7, window_bounds = array<i64: 2, 4, 16>}]} {
    %c0 = arith.constant 0 : index
    %c0_0 = arith.constant 0 : index
    %0 = vector.load %arg3[%c0, %c0_0] : memref<4x4xf32, #tpu.memory_space<vmem>>, vector<4x4xf32>
    %c0_1 = arith.constant 0 : index
    %c0_2 = arith.constant 0 : index
    %1 = vector.load %arg6[%c0_1, %c0_2] : memref<4x4xf32, #tpu.memory_space<vmem>>, vector<4x4xf32>
    %c0_3 = arith.constant 0 : index
    %c0_4 = arith.constant 0 : index
    %2 = vector.load %arg4[%c0_3, %c0_4] : memref<4x1xf32, #tpu.memory_space<vmem>>, vector<4x1xf32>
    %c0_5 = arith.constant 0 : index
    %c0_6 = arith.constant 0 : index
    %3 = vector.load %arg5[%c0_5, %c0_6] : memref<4x1xf32, #tpu.memory_space<vmem>>, vector<4x1xf32>
    %c0_7 = arith.constant 0 : index
    %c0_8 = arith.constant 0 : index
    %4 = vector.load %arg7[%c0_7, %c0_8] : memref<4x1xf32, #tpu.memory_space<vmem>>, vector<4x1xf32>
    %c0_9 = arith.constant 0 : index
    %c0_10 = arith.constant 0 : index
    %5 = vector.load %arg8[%c0_9, %c0_10] : memref<4x1xf32, #tpu.memory_space<vmem>>, vector<4x1xf32>
    %c0_11 = arith.constant 0 : index
    %c0_12 = arith.constant 0 : index
    %c0_13 = arith.constant 0 : index
    %6 = vector.load %arg2[%c0_11, %c0_12, %c0_13] : memref<2x4x16xf32, #tpu.memory_space<vmem>>, vector<1x4x16xf32>
    %7 = vector.shape_cast %6 : vector<1x4x16xf32> to vector<4x16xf32>
    %8 = vector.extract_strided_slice %0 {offsets = [0, 0], sizes = [4, 1], strides = [1, 1]} : vector<4x4xf32> to vector<4x1xf32>
    %9 = vector.extract_strided_slice %7 {offsets = [0, 0], sizes = [1, 16], strides = [1, 1]} : vector<4x16xf32> to vector<1x16xf32>
    %10 = vector.broadcast %8 : vector<4x1xf32> to vector<4x16xf32>
    %11 = vector.broadcast %9 : vector<1x16xf32> to vector<4x16xf32>
    %12 = arith.mulf %10, %11 : vector<4x16xf32>
    %13 = vector.extract_strided_slice %0 {offsets = [0, 1], sizes = [4, 1], strides = [1, 1]} : vector<4x4xf32> to vector<4x1xf32>
    %14 = vector.extract_strided_slice %7 {offsets = [1, 0], sizes = [1, 16], strides = [1, 1]} : vector<4x16xf32> to vector<1x16xf32>
    %15 = vector.broadcast %13 : vector<4x1xf32> to vector<4x16xf32>
    %16 = vector.broadcast %14 : vector<1x16xf32> to vector<4x16xf32>
    %17 = arith.mulf %15, %16 : vector<4x16xf32>
    %18 = vector.extract_strided_slice %0 {offsets = [0, 2], sizes = [4, 1], strides = [1, 1]} : vector<4x4xf32> to vector<4x1xf32>
    %19 = vector.extract_strided_slice %7 {offsets = [2, 0], sizes = [1, 16], strides = [1, 1]} : vector<4x16xf32> to vector<1x16xf32>
    %20 = vector.broadcast %18 : vector<4x1xf32> to vector<4x16xf32>
    %21 = vector.broadcast %19 : vector<1x16xf32> to vector<4x16xf32>
    %22 = arith.mulf %20, %21 : vector<4x16xf32>
    %23 = vector.extract_strided_slice %0 {offsets = [0, 3], sizes = [4, 1], strides = [1, 1]} : vector<4x4xf32> to vector<4x1xf32>
    %24 = vector.extract_strided_slice %7 {offsets = [3, 0], sizes = [1, 16], strides = [1, 1]} : vector<4x16xf32> to vector<1x16xf32>
    %25 = vector.broadcast %23 : vector<4x1xf32> to vector<4x16xf32>
    %26 = vector.broadcast %24 : vector<1x16xf32> to vector<4x16xf32>
    %27 = arith.mulf %25, %26 : vector<4x16xf32>
    %28 = arith.addf %12, %17 : vector<4x16xf32>
    %29 = arith.addf %22, %27 : vector<4x16xf32>
    %30 = arith.addf %28, %29 : vector<4x16xf32>
    %31 = vector.broadcast %2 : vector<4x1xf32> to vector<4x16xf32>
    %32 = arith.mulf %30, %31 : vector<4x16xf32>
    %33 = vector.broadcast %3 : vector<4x1xf32> to vector<4x16xf32>
    %34 = arith.addf %32, %33 : vector<4x16xf32>
    %cst = arith.constant 0.000000e+00 : f32
    %35 = vector.broadcast %cst : f32 to vector<4x16xf32>
    %36 = arith.maximumf %34, %35 : vector<4x16xf32>
    %37 = vector.extract_strided_slice %1 {offsets = [0, 0], sizes = [4, 1], strides = [1, 1]} : vector<4x4xf32> to vector<4x1xf32>
    %38 = vector.extract_strided_slice %36 {offsets = [0, 0], sizes = [1, 16], strides = [1, 1]} : vector<4x16xf32> to vector<1x16xf32>
    %39 = vector.broadcast %37 : vector<4x1xf32> to vector<4x16xf32>
    %40 = vector.broadcast %38 : vector<1x16xf32> to vector<4x16xf32>
    %41 = arith.mulf %39, %40 : vector<4x16xf32>
    %42 = vector.extract_strided_slice %1 {offsets = [0, 1], sizes = [4, 1], strides = [1, 1]} : vector<4x4xf32> to vector<4x1xf32>
    %43 = vector.extract_strided_slice %36 {offsets = [1, 0], sizes = [1, 16], strides = [1, 1]} : vector<4x16xf32> to vector<1x16xf32>
    %44 = vector.broadcast %42 : vector<4x1xf32> to vector<4x16xf32>
    %45 = vector.broadcast %43 : vector<1x16xf32> to vector<4x16xf32>
    %46 = arith.mulf %44, %45 : vector<4x16xf32>
    %47 = vector.extract_strided_slice %1 {offsets = [0, 2], sizes = [4, 1], strides = [1, 1]} : vector<4x4xf32> to vector<4x1xf32>
    %48 = vector.extract_strided_slice %36 {offsets = [2, 0], sizes = [1, 16], strides = [1, 1]} : vector<4x16xf32> to vector<1x16xf32>
    %49 = vector.broadcast %47 : vector<4x1xf32> to vector<4x16xf32>
    %50 = vector.broadcast %48 : vector<1x16xf32> to vector<4x16xf32>
    %51 = arith.mulf %49, %50 : vector<4x16xf32>
    %52 = vector.extract_strided_slice %1 {offsets = [0, 3], sizes = [4, 1], strides = [1, 1]} : vector<4x4xf32> to vector<4x1xf32>
    %53 = vector.extract_strided_slice %36 {offsets = [3, 0], sizes = [1, 16], strides = [1, 1]} : vector<4x16xf32> to vector<1x16xf32>
    %54 = vector.broadcast %52 : vector<4x1xf32> to vector<4x16xf32>
    %55 = vector.broadcast %53 : vector<1x16xf32> to vector<4x16xf32>
    %56 = arith.mulf %54, %55 : vector<4x16xf32>
    %57 = arith.addf %41, %46 : vector<4x16xf32>
    %58 = arith.addf %51, %56 : vector<4x16xf32>
    %59 = arith.addf %57, %58 : vector<4x16xf32>
    %60 = vector.broadcast %4 : vector<4x1xf32> to vector<4x16xf32>
    %61 = arith.mulf %59, %60 : vector<4x16xf32>
    %62 = vector.broadcast %5 : vector<4x1xf32> to vector<4x16xf32>
    %63 = arith.addf %61, %62 : vector<4x16xf32>
    %cst_14 = arith.constant 0.000000e+00 : f32
    %64 = vector.broadcast %cst_14 : f32 to vector<4x16xf32>
    %65 = arith.maximumf %63, %64 : vector<4x16xf32>
    %66 = arith.addf %7, %65 : vector<4x16xf32>
    %c0_15 = arith.constant 0 : index
    %c0_16 = arith.constant 0 : index
    %c0_17 = arith.constant 0 : index
    %67 = vector.load %arg9[%c0_15, %c0_16, %c0_17] : memref<2x4x16xf32, #tpu.memory_space<vmem>>, vector<1x4x16xf32>
    %68 = vector.shape_cast %67 : vector<1x4x16xf32> to vector<4x16xf32>
    %69 = vector.shape_cast %66 : vector<4x16xf32> to vector<1x4x16xf32>
    tpu.vector_store %arg9[%c0_15, %c0_16, %c0_17], %69 {strides = array<i32>} : memref<2x4x16xf32, #tpu.memory_space<vmem>>, vector<1x4x16xf32>,
    %c1 = arith.constant 1 : index
    %c0_18 = arith.constant 0 : index
    %c0_19 = arith.constant 0 : index
    %70 = vector.load %arg2[%c1, %c0_18, %c0_19] : memref<2x4x16xf32, #tpu.memory_space<vmem>>, vector<1x4x16xf32>
    %71 = vector.shape_cast %70 : vector<1x4x16xf32> to vector<4x16xf32>
    %72 = vector.extract_strided_slice %0 {offsets = [0, 0], sizes = [4, 1], strides = [1, 1]} : vector<4x4xf32> to vector<4x1xf32>
    %73 = vector.extract_strided_slice %71 {offsets = [0, 0], sizes = [1, 16], strides = [1, 1]} : vector<4x16xf32> to vector<1x16xf32>
    %74 = vector.broadcast %72 : vector<4x1xf32> to vector<4x16xf32>
    %75 = vector.broadcast %73 : vector<1x16xf32> to vector<4x16xf32>
    %76 = arith.mulf %74, %75 : vector<4x16xf32>
    %77 = vector.extract_strided_slice %0 {offsets = [0, 1], sizes = [4, 1], strides = [1, 1]} : vector<4x4xf32> to vector<4x1xf32>
    %78 = vector.extract_strided_slice %71 {offsets = [1, 0], sizes = [1, 16], strides = [1, 1]} : vector<4x16xf32> to vector<1x16xf32>
    %79 = vector.broadcast %77 : vector<4x1xf32> to vector<4x16xf32>
    %80 = vector.broadcast %78 : vector<1x16xf32> to vector<4x16xf32>
    %81 = arith.mulf %79, %80 : vector<4x16xf32>
    %82 = vector.extract_strided_slice %0 {offsets = [0, 2], sizes = [4, 1], strides = [1, 1]} : vector<4x4xf32> to vector<4x1xf32>
    %83 = vector.extract_strided_slice %71 {offsets = [2, 0], sizes = [1, 16], strides = [1, 1]} : vector<4x16xf32> to vector<1x16xf32>
    %84 = vector.broadcast %82 : vector<4x1xf32> to vector<4x16xf32>
    %85 = vector.broadcast %83 : vector<1x16xf32> to vector<4x16xf32>
    %86 = arith.mulf %84, %85 : vector<4x16xf32>
    %87 = vector.extract_strided_slice %0 {offsets = [0, 3], sizes = [4, 1], strides = [1, 1]} : vector<4x4xf32> to vector<4x1xf32>
    %88 = vector.extract_strided_slice %71 {offsets = [3, 0], sizes = [1, 16], strides = [1, 1]} : vector<4x16xf32> to vector<1x16xf32>
    %89 = vector.broadcast %87 : vector<4x1xf32> to vector<4x16xf32>
    %90 = vector.broadcast %88 : vector<1x16xf32> to vector<4x16xf32>
    %91 = arith.mulf %89, %90 : vector<4x16xf32>
    %92 = arith.addf %76, %81 : vector<4x16xf32>
    %93 = arith.addf %86, %91 : vector<4x16xf32>
    %94 = arith.addf %92, %93 : vector<4x16xf32>
    %95 = vector.broadcast %2 : vector<4x1xf32> to vector<4x16xf32>
    %96 = arith.mulf %94, %95 : vector<4x16xf32>
    %97 = vector.broadcast %3 : vector<4x1xf32> to vector<4x16xf32>
    %98 = arith.addf %96, %97 : vector<4x16xf32>
    %cst_20 = arith.constant 0.000000e+00 : f32
    %99 = vector.broadcast %cst_20 : f32 to vector<4x16xf32>
    %100 = arith.maximumf %98, %99 : vector<4x16xf32>
    %101 = vector.extract_strided_slice %1 {offsets = [0, 0], sizes = [4, 1], strides = [1, 1]} : vector<4x4xf32> to vector<4x1xf32>
    %102 = vector.extract_strided_slice %100 {offsets = [0, 0], sizes = [1, 16], strides = [1, 1]} : vector<4x16xf32> to vector<1x16xf32>
    %103 = vector.broadcast %101 : vector<4x1xf32> to vector<4x16xf32>
    %104 = vector.broadcast %102 : vector<1x16xf32> to vector<4x16xf32>
    %105 = arith.mulf %103, %104 : vector<4x16xf32>
    %106 = vector.extract_strided_slice %1 {offsets = [0, 1], sizes = [4, 1], strides = [1, 1]} : vector<4x4xf32> to vector<4x1xf32>
    %107 = vector.extract_strided_slice %100 {offsets = [1, 0], sizes = [1, 16], strides = [1, 1]} : vector<4x16xf32> to vector<1x16xf32>
    %108 = vector.broadcast %106 : vector<4x1xf32> to vector<4x16xf32>
    %109 = vector.broadcast %107 : vector<1x16xf32> to vector<4x16xf32>
    %110 = arith.mulf %108, %109 : vector<4x16xf32>
    %111 = vector.extract_strided_slice %1 {offsets = [0, 2], sizes = [4, 1], strides = [1, 1]} : vector<4x4xf32> to vector<4x1xf32>
    %112 = vector.extract_strided_slice %100 {offsets = [2, 0], sizes = [1, 16], strides = [1, 1]} : vector<4x16xf32> to vector<1x16xf32>
    %113 = vector.broadcast %111 : vector<4x1xf32> to vector<4x16xf32>
    %114 = vector.broadcast %112 : vector<1x16xf32> to vector<4x16xf32>
    %115 = arith.mulf %113, %114 : vector<4x16xf32>
    %116 = vector.extract_strided_slice %1 {offsets = [0, 3], sizes = [4, 1], strides = [1, 1]} : vector<4x4xf32> to vector<4x1xf32>
    %117 = vector.extract_strided_slice %100 {offsets = [3, 0], sizes = [1, 16], strides = [1, 1]} : vector<4x16xf32> to vector<1x16xf32>
    %118 = vector.broadcast %116 : vector<4x1xf32> to vector<4x16xf32>
    %119 = vector.broadcast %117 : vector<1x16xf32> to vector<4x16xf32>
    %120 = arith.mulf %118, %119 : vector<4x16xf32>
    %121 = arith.addf %105, %110 : vector<4x16xf32>
    %122 = arith.addf %115, %120 : vector<4x16xf32>
    %123 = arith.addf %121, %122 : vector<4x16xf32>
    %124 = vector.broadcast %4 : vector<4x1xf32> to vector<4x16xf32>
    %125 = arith.mulf %123, %124 : vector<4x16xf32>
    %126 = vector.broadcast %5 : vector<4x1xf32> to vector<4x16xf32>
    %127 = arith.addf %125, %126 : vector<4x16xf32>
    %cst_21 = arith.constant 0.000000e+00 : f32
    %128 = vector.broadcast %cst_21 : f32 to vector<4x16xf32>
    %129 = arith.maximumf %127, %128 : vector<4x16xf32>
    %130 = arith.addf %71, %129 : vector<4x16xf32>
    %c1_22 = arith.constant 1 : index
    %c0_23 = arith.constant 0 : index
    %c0_24 = arith.constant 0 : index
    %131 = vector.load %arg9[%c1_22, %c0_23, %c0_24] : memref<2x4x16xf32, #tpu.memory_space<vmem>>, vector<1x4x16xf32>
    %132 = vector.shape_cast %131 : vector<1x4x16xf32> to vector<4x16xf32>
    %133 = vector.shape_cast %130 : vector<4x16xf32> to vector<1x4x16xf32>
    tpu.vector_store %arg9[%c1_22, %c0_23, %c0_24], %133 {strides = array<i32>} : memref<2x4x16xf32, #tpu.memory_space<vmem>>, vector<1x4x16xf32>,
    return
  }
  func.func @transform_0(%arg0: i32, %arg1: i32) -> (i32, i32, i32) {
    %c0_i32 = arith.constant 0 : i32
    %c0_i32_0 = arith.constant 0 : i32
    return %arg0, %c0_i32, %arg1 : i32, i32, i32
  }
  func.func @transform_1(%arg0: i32, %arg1: i32) -> (i32, i32) {
    %c0_i32 = arith.constant 0 : i32
    %c0_i32_0 = arith.constant 0 : i32
    %c0_i32_1 = arith.constant 0 : i32
    return %c0_i32, %c0_i32_0 : i32, i32
  }
  func.func @transform_2(%arg0: i32, %arg1: i32) -> (i32, i32) {
    %c0_i32 = arith.constant 0 : i32
    %c0_i32_0 = arith.constant 0 : i32
    %c0_i32_1 = arith.constant 0 : i32
    return %c0_i32, %c0_i32_0 : i32, i32
  }
  func.func @transform_3(%arg0: i32, %arg1: i32) -> (i32, i32) {
    %c0_i32 = arith.constant 0 : i32
    %c0_i32_0 = arith.constant 0 : i32
    %c0_i32_1 = arith.constant 0 : i32
    return %c0_i32, %c0_i32_0 : i32, i32
  }
  func.func @transform_4(%arg0: i32, %arg1: i32) -> (i32, i32) {
    %c0_i32 = arith.constant 0 : i32
    %c0_i32_0 = arith.constant 0 : i32
    %c0_i32_1 = arith.constant 0 : i32
    return %c0_i32, %c0_i32_0 : i32, i32
  }
  func.func @transform_5(%arg0: i32, %arg1: i32) -> (i32, i32) {
    %c0_i32 = arith.constant 0 : i32
    %c0_i32_0 = arith.constant 0 : i32
    %c0_i32_1 = arith.constant 0 : i32
    return %c0_i32, %c0_i32_0 : i32, i32
  }
  func.func @transform_6(%arg0: i32, %arg1: i32) -> (i32, i32) {
    %c0_i32 = arith.constant 0 : i32
    %c0_i32_0 = arith.constant 0 : i32
    %c0_i32_1 = arith.constant 0 : i32
    return %c0_i32, %c0_i32_0 : i32, i32
  }
  func.func @transform_7(%arg0: i32, %arg1: i32) -> (i32, i32, i32) {
    %c0_i32 = arith.constant 0 : i32
    %c0_i32_0 = arith.constant 0 : i32
    return %arg0, %c0_i32, %arg1 : i32, i32, i32
  }
}

module attributes {stable_mosaic.version = 11 : i64} {
  func.func @kernel(%arg0: i32, %arg1: i32, %arg2: memref<2x4x16xf32, #tpu.memory_space<vmem>>, %arg3: memref<4x4xf32, #tpu.memory_space<vmem>>, %arg4: memref<4x1xf32, #tpu.memory_space<vmem>>, %arg5: memref<4x1xf32, #tpu.memory_space<vmem>>, %arg6: memref<4x4xf32, #tpu.memory_space<vmem>>, %arg7: memref<1x4x1xf32, #tpu.memory_space<vmem>>, %arg8: memref<1x4x1xf32, #tpu.memory_space<vmem>>) attributes {dimension_semantics = [#tpu.dimension_semantics<parallel>, #tpu.dimension_semantics<arbitrary>], iteration_bounds = array<i64: 1, 1>, scalar_prefetch = 0 : i64, scratch_operands = 0 : i64, tpu.core_type = #tpu.core_type<tc>, window_params = [{transform_indices = @transform_0, window_bounds = array<i64: 2, 4, 16>}, {pipeline_mode = #tpu.pipeline_mode<synchronous>, transform_indices = @transform_1, window_bounds = array<i64: 4, 4>}, {pipeline_mode = #tpu.pipeline_mode<synchronous>, transform_indices = @transform_2, window_bounds = array<i64: 4, 1>}, {pipeline_mode = #tpu.pipeline_mode<synchronous>, transform_indices = @transform_3, window_bounds = array<i64: 4, 1>}, {pipeline_mode = #tpu.pipeline_mode<synchronous>, transform_indices = @transform_4, window_bounds = array<i64: 4, 4>}, {transform_indices = @transform_5, window_bounds = array<i64: 1, 4, 1>}, {transform_indices = @transform_6, window_bounds = array<i64: 1, 4, 1>}]} {
    %c0_i32 = arith.constant 0 : i32
    %0 = arith.cmpi eq, %arg1, %c0_i32 : i32
    %1 = arith.extui %0 : i1 to i32
    %c0_i32_0 = arith.constant 0 : i32
    %2 = arith.cmpi ne, %1, %c0_i32_0 : i32
    scf.if %2 {
      %cst_30 = arith.constant 0.000000e+00 : f32
      %135 = vector.broadcast %cst_30 : f32 to vector<1x4x1xf32>
      %c0_31 = arith.constant 0 : index
      %c0_32 = arith.constant 0 : index
      %c0_33 = arith.constant 0 : index
      %136 = vector.load %arg7[%c0_31, %c0_32, %c0_33] : memref<1x4x1xf32, #tpu.memory_space<vmem>>, vector<1x4x1xf32>
      tpu.vector_store %arg7[%c0_31, %c0_32, %c0_33], %135 {strides = array<i32>} : memref<1x4x1xf32, #tpu.memory_space<vmem>>, vector<1x4x1xf32>,
      %cst_34 = arith.constant 0.000000e+00 : f32
      %137 = vector.broadcast %cst_34 : f32 to vector<1x4x1xf32>
      %c0_35 = arith.constant 0 : index
      %c0_36 = arith.constant 0 : index
      %c0_37 = arith.constant 0 : index
      %138 = vector.load %arg8[%c0_35, %c0_36, %c0_37] : memref<1x4x1xf32, #tpu.memory_space<vmem>>, vector<1x4x1xf32>
      tpu.vector_store %arg8[%c0_35, %c0_36, %c0_37], %137 {strides = array<i32>} : memref<1x4x1xf32, #tpu.memory_space<vmem>>, vector<1x4x1xf32>,
    } else {
    }
    %c0 = arith.constant 0 : index
    %c0_1 = arith.constant 0 : index
    %3 = vector.load %arg3[%c0, %c0_1] : memref<4x4xf32, #tpu.memory_space<vmem>>, vector<4x4xf32>
    %c0_2 = arith.constant 0 : index
    %c0_3 = arith.constant 0 : index
    %4 = vector.load %arg6[%c0_2, %c0_3] : memref<4x4xf32, #tpu.memory_space<vmem>>, vector<4x4xf32>
    %c0_4 = arith.constant 0 : index
    %c0_5 = arith.constant 0 : index
    %5 = vector.load %arg4[%c0_4, %c0_5] : memref<4x1xf32, #tpu.memory_space<vmem>>, vector<4x1xf32>
    %c0_6 = arith.constant 0 : index
    %c0_7 = arith.constant 0 : index
    %6 = vector.load %arg5[%c0_6, %c0_7] : memref<4x1xf32, #tpu.memory_space<vmem>>, vector<4x1xf32>
    %c0_8 = arith.constant 0 : index
    %c0_9 = arith.constant 0 : index
    %c0_10 = arith.constant 0 : index
    %7 = vector.load %arg2[%c0_8, %c0_9, %c0_10] : memref<2x4x16xf32, #tpu.memory_space<vmem>>, vector<1x4x16xf32>
    %8 = vector.shape_cast %7 : vector<1x4x16xf32> to vector<4x16xf32>
    %9 = vector.extract_strided_slice %3 {offsets = [0, 0], sizes = [4, 1], strides = [1, 1]} : vector<4x4xf32> to vector<4x1xf32>
    %10 = vector.extract_strided_slice %8 {offsets = [0, 0], sizes = [1, 16], strides = [1, 1]} : vector<4x16xf32> to vector<1x16xf32>
    %11 = vector.broadcast %9 : vector<4x1xf32> to vector<4x16xf32>
    %12 = vector.broadcast %10 : vector<1x16xf32> to vector<4x16xf32>
    %13 = arith.mulf %11, %12 : vector<4x16xf32>
    %14 = vector.extract_strided_slice %3 {offsets = [0, 1], sizes = [4, 1], strides = [1, 1]} : vector<4x4xf32> to vector<4x1xf32>
    %15 = vector.extract_strided_slice %8 {offsets = [1, 0], sizes = [1, 16], strides = [1, 1]} : vector<4x16xf32> to vector<1x16xf32>
    %16 = vector.broadcast %14 : vector<4x1xf32> to vector<4x16xf32>
    %17 = vector.broadcast %15 : vector<1x16xf32> to vector<4x16xf32>
    %18 = arith.mulf %16, %17 : vector<4x16xf32>
    %19 = vector.extract_strided_slice %3 {offsets = [0, 2], sizes = [4, 1], strides = [1, 1]} : vector<4x4xf32> to vector<4x1xf32>
    %20 = vector.extract_strided_slice %8 {offsets = [2, 0], sizes = [1, 16], strides = [1, 1]} : vector<4x16xf32> to vector<1x16xf32>
    %21 = vector.broadcast %19 : vector<4x1xf32> to vector<4x16xf32>
    %22 = vector.broadcast %20 : vector<1x16xf32> to vector<4x16xf32>
    %23 = arith.mulf %21, %22 : vector<4x16xf32>
    %24 = vector.extract_strided_slice %3 {offsets = [0, 3], sizes = [4, 1], strides = [1, 1]} : vector<4x4xf32> to vector<4x1xf32>
    %25 = vector.extract_strided_slice %8 {offsets = [3, 0], sizes = [1, 16], strides = [1, 1]} : vector<4x16xf32> to vector<1x16xf32>
    %26 = vector.broadcast %24 : vector<4x1xf32> to vector<4x16xf32>
    %27 = vector.broadcast %25 : vector<1x16xf32> to vector<4x16xf32>
    %28 = arith.mulf %26, %27 : vector<4x16xf32>
    %29 = arith.addf %13, %18 : vector<4x16xf32>
    %30 = arith.addf %23, %28 : vector<4x16xf32>
    %31 = arith.addf %29, %30 : vector<4x16xf32>
    %32 = vector.broadcast %5 : vector<4x1xf32> to vector<4x16xf32>
    %33 = arith.mulf %31, %32 : vector<4x16xf32>
    %34 = vector.broadcast %6 : vector<4x1xf32> to vector<4x16xf32>
    %35 = arith.addf %33, %34 : vector<4x16xf32>
    %cst = arith.constant 0.000000e+00 : f32
    %36 = vector.broadcast %cst : f32 to vector<4x16xf32>
    %37 = arith.maximumf %35, %36 : vector<4x16xf32>
    %38 = vector.extract_strided_slice %4 {offsets = [0, 0], sizes = [4, 1], strides = [1, 1]} : vector<4x4xf32> to vector<4x1xf32>
    %39 = vector.extract_strided_slice %37 {offsets = [0, 0], sizes = [1, 16], strides = [1, 1]} : vector<4x16xf32> to vector<1x16xf32>
    %40 = vector.broadcast %38 : vector<4x1xf32> to vector<4x16xf32>
    %41 = vector.broadcast %39 : vector<1x16xf32> to vector<4x16xf32>
    %42 = arith.mulf %40, %41 : vector<4x16xf32>
    %43 = vector.extract_strided_slice %4 {offsets = [0, 1], sizes = [4, 1], strides = [1, 1]} : vector<4x4xf32> to vector<4x1xf32>
    %44 = vector.extract_strided_slice %37 {offsets = [1, 0], sizes = [1, 16], strides = [1, 1]} : vector<4x16xf32> to vector<1x16xf32>
    %45 = vector.broadcast %43 : vector<4x1xf32> to vector<4x16xf32>
    %46 = vector.broadcast %44 : vector<1x16xf32> to vector<4x16xf32>
    %47 = arith.mulf %45, %46 : vector<4x16xf32>
    %48 = vector.extract_strided_slice %4 {offsets = [0, 2], sizes = [4, 1], strides = [1, 1]} : vector<4x4xf32> to vector<4x1xf32>
    %49 = vector.extract_strided_slice %37 {offsets = [2, 0], sizes = [1, 16], strides = [1, 1]} : vector<4x16xf32> to vector<1x16xf32>
    %50 = vector.broadcast %48 : vector<4x1xf32> to vector<4x16xf32>
    %51 = vector.broadcast %49 : vector<1x16xf32> to vector<4x16xf32>
    %52 = arith.mulf %50, %51 : vector<4x16xf32>
    %53 = vector.extract_strided_slice %4 {offsets = [0, 3], sizes = [4, 1], strides = [1, 1]} : vector<4x4xf32> to vector<4x1xf32>
    %54 = vector.extract_strided_slice %37 {offsets = [3, 0], sizes = [1, 16], strides = [1, 1]} : vector<4x16xf32> to vector<1x16xf32>
    %55 = vector.broadcast %53 : vector<4x1xf32> to vector<4x16xf32>
    %56 = vector.broadcast %54 : vector<1x16xf32> to vector<4x16xf32>
    %57 = arith.mulf %55, %56 : vector<4x16xf32>
    %58 = arith.addf %42, %47 : vector<4x16xf32>
    %59 = arith.addf %52, %57 : vector<4x16xf32>
    %60 = arith.addf %58, %59 : vector<4x16xf32>
    %cst_11 = arith.constant dense<0.000000e+00> : vector<4xf32>
    %61 = vector.multi_reduction <add>, %60, %cst_11 [1] : vector<4x16xf32> to vector<4xf32>
    %62 = vector.shape_cast %61 : vector<4xf32> to vector<4x1xf32>
    %63 = arith.mulf %60, %60 : vector<4x16xf32>
    %cst_12 = arith.constant dense<0.000000e+00> : vector<4xf32>
    %64 = vector.multi_reduction <add>, %63, %cst_12 [1] : vector<4x16xf32> to vector<4xf32>
    %65 = vector.shape_cast %64 : vector<4xf32> to vector<4x1xf32>
    %c1 = arith.constant 1 : index
    %c0_13 = arith.constant 0 : index
    %c0_14 = arith.constant 0 : index
    %66 = vector.load %arg2[%c1, %c0_13, %c0_14] : memref<2x4x16xf32, #tpu.memory_space<vmem>>, vector<1x4x16xf32>
    %67 = vector.shape_cast %66 : vector<1x4x16xf32> to vector<4x16xf32>
    %68 = vector.extract_strided_slice %3 {offsets = [0, 0], sizes = [4, 1], strides = [1, 1]} : vector<4x4xf32> to vector<4x1xf32>
    %69 = vector.extract_strided_slice %67 {offsets = [0, 0], sizes = [1, 16], strides = [1, 1]} : vector<4x16xf32> to vector<1x16xf32>
    %70 = vector.broadcast %68 : vector<4x1xf32> to vector<4x16xf32>
    %71 = vector.broadcast %69 : vector<1x16xf32> to vector<4x16xf32>
    %72 = arith.mulf %70, %71 : vector<4x16xf32>
    %73 = vector.extract_strided_slice %3 {offsets = [0, 1], sizes = [4, 1], strides = [1, 1]} : vector<4x4xf32> to vector<4x1xf32>
    %74 = vector.extract_strided_slice %67 {offsets = [1, 0], sizes = [1, 16], strides = [1, 1]} : vector<4x16xf32> to vector<1x16xf32>
    %75 = vector.broadcast %73 : vector<4x1xf32> to vector<4x16xf32>
    %76 = vector.broadcast %74 : vector<1x16xf32> to vector<4x16xf32>
    %77 = arith.mulf %75, %76 : vector<4x16xf32>
    %78 = vector.extract_strided_slice %3 {offsets = [0, 2], sizes = [4, 1], strides = [1, 1]} : vector<4x4xf32> to vector<4x1xf32>
    %79 = vector.extract_strided_slice %67 {offsets = [2, 0], sizes = [1, 16], strides = [1, 1]} : vector<4x16xf32> to vector<1x16xf32>
    %80 = vector.broadcast %78 : vector<4x1xf32> to vector<4x16xf32>
    %81 = vector.broadcast %79 : vector<1x16xf32> to vector<4x16xf32>
    %82 = arith.mulf %80, %81 : vector<4x16xf32>
    %83 = vector.extract_strided_slice %3 {offsets = [0, 3], sizes = [4, 1], strides = [1, 1]} : vector<4x4xf32> to vector<4x1xf32>
    %84 = vector.extract_strided_slice %67 {offsets = [3, 0], sizes = [1, 16], strides = [1, 1]} : vector<4x16xf32> to vector<1x16xf32>
    %85 = vector.broadcast %83 : vector<4x1xf32> to vector<4x16xf32>
    %86 = vector.broadcast %84 : vector<1x16xf32> to vector<4x16xf32>
    %87 = arith.mulf %85, %86 : vector<4x16xf32>
    %88 = arith.addf %72, %77 : vector<4x16xf32>
    %89 = arith.addf %82, %87 : vector<4x16xf32>
    %90 = arith.addf %88, %89 : vector<4x16xf32>
    %91 = vector.broadcast %5 : vector<4x1xf32> to vector<4x16xf32>
    %92 = arith.mulf %90, %91 : vector<4x16xf32>
    %93 = vector.broadcast %6 : vector<4x1xf32> to vector<4x16xf32>
    %94 = arith.addf %92, %93 : vector<4x16xf32>
    %cst_15 = arith.constant 0.000000e+00 : f32
    %95 = vector.broadcast %cst_15 : f32 to vector<4x16xf32>
    %96 = arith.maximumf %94, %95 : vector<4x16xf32>
    %97 = vector.extract_strided_slice %4 {offsets = [0, 0], sizes = [4, 1], strides = [1, 1]} : vector<4x4xf32> to vector<4x1xf32>
    %98 = vector.extract_strided_slice %96 {offsets = [0, 0], sizes = [1, 16], strides = [1, 1]} : vector<4x16xf32> to vector<1x16xf32>
    %99 = vector.broadcast %97 : vector<4x1xf32> to vector<4x16xf32>
    %100 = vector.broadcast %98 : vector<1x16xf32> to vector<4x16xf32>
    %101 = arith.mulf %99, %100 : vector<4x16xf32>
    %102 = vector.extract_strided_slice %4 {offsets = [0, 1], sizes = [4, 1], strides = [1, 1]} : vector<4x4xf32> to vector<4x1xf32>
    %103 = vector.extract_strided_slice %96 {offsets = [1, 0], sizes = [1, 16], strides = [1, 1]} : vector<4x16xf32> to vector<1x16xf32>
    %104 = vector.broadcast %102 : vector<4x1xf32> to vector<4x16xf32>
    %105 = vector.broadcast %103 : vector<1x16xf32> to vector<4x16xf32>
    %106 = arith.mulf %104, %105 : vector<4x16xf32>
    %107 = vector.extract_strided_slice %4 {offsets = [0, 2], sizes = [4, 1], strides = [1, 1]} : vector<4x4xf32> to vector<4x1xf32>
    %108 = vector.extract_strided_slice %96 {offsets = [2, 0], sizes = [1, 16], strides = [1, 1]} : vector<4x16xf32> to vector<1x16xf32>
    %109 = vector.broadcast %107 : vector<4x1xf32> to vector<4x16xf32>
    %110 = vector.broadcast %108 : vector<1x16xf32> to vector<4x16xf32>
    %111 = arith.mulf %109, %110 : vector<4x16xf32>
    %112 = vector.extract_strided_slice %4 {offsets = [0, 3], sizes = [4, 1], strides = [1, 1]} : vector<4x4xf32> to vector<4x1xf32>
    %113 = vector.extract_strided_slice %96 {offsets = [3, 0], sizes = [1, 16], strides = [1, 1]} : vector<4x16xf32> to vector<1x16xf32>
    %114 = vector.broadcast %112 : vector<4x1xf32> to vector<4x16xf32>
    %115 = vector.broadcast %113 : vector<1x16xf32> to vector<4x16xf32>
    %116 = arith.mulf %114, %115 : vector<4x16xf32>
    %117 = arith.addf %101, %106 : vector<4x16xf32>
    %118 = arith.addf %111, %116 : vector<4x16xf32>
    %119 = arith.addf %117, %118 : vector<4x16xf32>
    %cst_16 = arith.constant dense<0.000000e+00> : vector<4xf32>
    %120 = vector.multi_reduction <add>, %119, %cst_16 [1] : vector<4x16xf32> to vector<4xf32>
    %121 = vector.shape_cast %120 : vector<4xf32> to vector<4x1xf32>
    %122 = arith.mulf %119, %119 : vector<4x16xf32>
    %cst_17 = arith.constant dense<0.000000e+00> : vector<4xf32>
    %123 = vector.multi_reduction <add>, %122, %cst_17 [1] : vector<4x16xf32> to vector<4xf32>
    %124 = vector.shape_cast %123 : vector<4xf32> to vector<4x1xf32>
    %125 = arith.addf %62, %121 : vector<4x1xf32>
    %126 = arith.addf %65, %124 : vector<4x1xf32>
    %c0_18 = arith.constant 0 : index
    %c0_19 = arith.constant 0 : index
    %c0_20 = arith.constant 0 : index
    %127 = vector.load %arg7[%c0_18, %c0_19, %c0_20] : memref<1x4x1xf32, #tpu.memory_space<vmem>>, vector<1x4x1xf32>
    %128 = vector.shape_cast %125 : vector<4x1xf32> to vector<1x4x1xf32>
    %129 = arith.addf %127, %128 : vector<1x4x1xf32>
    %c0_21 = arith.constant 0 : index
    %c0_22 = arith.constant 0 : index
    %c0_23 = arith.constant 0 : index
    %130 = vector.load %arg7[%c0_21, %c0_22, %c0_23] : memref<1x4x1xf32, #tpu.memory_space<vmem>>, vector<1x4x1xf32>
    tpu.vector_store %arg7[%c0_21, %c0_22, %c0_23], %129 {strides = array<i32>} : memref<1x4x1xf32, #tpu.memory_space<vmem>>, vector<1x4x1xf32>,
    %c0_24 = arith.constant 0 : index
    %c0_25 = arith.constant 0 : index
    %c0_26 = arith.constant 0 : index
    %131 = vector.load %arg8[%c0_24, %c0_25, %c0_26] : memref<1x4x1xf32, #tpu.memory_space<vmem>>, vector<1x4x1xf32>
    %132 = vector.shape_cast %126 : vector<4x1xf32> to vector<1x4x1xf32>
    %133 = arith.addf %131, %132 : vector<1x4x1xf32>
    %c0_27 = arith.constant 0 : index
    %c0_28 = arith.constant 0 : index
    %c0_29 = arith.constant 0 : index
    %134 = vector.load %arg8[%c0_27, %c0_28, %c0_29] : memref<1x4x1xf32, #tpu.memory_space<vmem>>, vector<1x4x1xf32>
    tpu.vector_store %arg8[%c0_27, %c0_28, %c0_29], %133 {strides = array<i32>} : memref<1x4x1xf32, #tpu.memory_space<vmem>>, vector<1x4x1xf32>,
    return
  }
  func.func @transform_0(%arg0: i32, %arg1: i32) -> (i32, i32, i32) {
    %c0_i32 = arith.constant 0 : i32
    %c0_i32_0 = arith.constant 0 : i32
    return %arg0, %c0_i32, %arg1 : i32, i32, i32
  }
  func.func @transform_1(%arg0: i32, %arg1: i32) -> (i32, i32) {
    %c0_i32 = arith.constant 0 : i32
    %c0_i32_0 = arith.constant 0 : i32
    %c0_i32_1 = arith.constant 0 : i32
    return %c0_i32, %c0_i32_0 : i32, i32
  }
  func.func @transform_2(%arg0: i32, %arg1: i32) -> (i32, i32) {
    %c0_i32 = arith.constant 0 : i32
    %c0_i32_0 = arith.constant 0 : i32
    %c0_i32_1 = arith.constant 0 : i32
    return %c0_i32, %c0_i32_0 : i32, i32
  }
  func.func @transform_3(%arg0: i32, %arg1: i32) -> (i32, i32) {
    %c0_i32 = arith.constant 0 : i32
    %c0_i32_0 = arith.constant 0 : i32
    %c0_i32_1 = arith.constant 0 : i32
    return %c0_i32, %c0_i32_0 : i32, i32
  }
  func.func @transform_4(%arg0: i32, %arg1: i32) -> (i32, i32) {
    %c0_i32 = arith.constant 0 : i32
    %c0_i32_0 = arith.constant 0 : i32
    %c0_i32_1 = arith.constant 0 : i32
    return %c0_i32, %c0_i32_0 : i32, i32
  }
  func.func @transform_5(%arg0: i32, %arg1: i32) -> (i32, i32, i32) {
    %c0_i32 = arith.constant 0 : i32
    %c0_i32_0 = arith.constant 0 : i32
    %c0_i32_1 = arith.constant 0 : i32
    return %arg0, %c0_i32, %c0_i32_0 : i32, i32, i32
  }
  func.func @transform_6(%arg0: i32, %arg1: i32) -> (i32, i32, i32) {
    %c0_i32 = arith.constant 0 : i32
    %c0_i32_0 = arith.constant 0 : i32
    %c0_i32_1 = arith.constant 0 : i32
    return %arg0, %c0_i32, %c0_i32_0 : i32, i32, i32
  }
}

</mosaic_0001>

<bundles_post_ra>
// kernel: residue_module_forward.3
= control target key start
LH: loop header
LB: loop body
LE: loop exit
PB: predicated region body
PF: predicated region fallthrough
CT: control target
= control target key end

     0   :  { %v130_v0 = vmov 2   ;;  %v131_v1 = vmov 0   ;;  %v132_v3 = vmov 3   ;;  %v133_v4 = vmov 1   ;;  %s186_s1 = inlined_call_operand.vmem [shape: f32[4,4], index: 1, kind: input, shape index: {}]   ;;  %s187_s0 = inlined_call_operand.vmem [shape: f32[2,4,16], index: 0, kind: input, shape index: {}]   ;;  %s188_s3 = inlined_call_operand.vmem [shape: f32[1,4,1], index: 3, kind: output, shape index: {1}]   ;;  %s189_s2 = inlined_call_operand.vmem [shape: f32[1,4,1], index: 2, kind: output, shape index: {0}]  }
   0x1   :  { %127 = vset.pattern.permute.xlu1 %v130_v0  ;;  %125 = vset.pattern.permute.xlu0 %v131_v1  ;;  %v20_v2 = vld [vmem:[%s186_s1] sm:$0xf]  ;;  %v27_v5 = vlaneseq  ;;  %v119_v10 = vld [vmem:[%s187_s0 + $0x4] sm:$0xf]  ;;  %vm62_vm0 = vcmask 125952   ;;  %vm17_vm1 = vcmask 3072  }
   0x2   :  { %42 = vperm.xlu1 %127, %v20_v2   ;;  %24 = vperm.xlu0 %125, %v20_v2   ;;  %v21_v9 = vld [vmem:[%s187_s0] sm:$0xf]  ;;  %v134_v45 = vmov 0.0  }
   0x3   :  { %v28_v6 = vshrl.u32 %v27_v5, 7  ;;  %19 = vst.msk [vmem:[%s188_s3] sm:$0xf] %vm17_vm1, %v134_v45  ;;  %18 = vst.msk [vmem:[%s189_s2] sm:$0xf] %vm17_vm1, %v134_v45 }
   0x5   :  { %v47_v7 = vsub.s32 2, %v28_v6  ;;  %v29_v8 = vsub.s32 0, %v28_v6  ;;  %v56_v11 = vsub.s32 3, %v28_v6  ;;  %v38_v12 = vsub.s32 1, %v28_v6 }
   0x6   :  { %128 = vset.pattern.permute.xlu1 %v132_v3  ;;  %126 = vset.pattern.permute.xlu0 %v133_v4 }
   0x7   :  { %51 = vperm.xlu1 %128, %v20_v2   ;;  %33 = vperm.xlu0 %126, %v20_v2   ;;  %v48_v15 = vrot.slane %v21_v9, %v47_v7  ;;  %v85_v16 = vrot.slane %v119_v10, %v47_v7  ;;  %v30_v17 = vrot.slane %v21_v9, %v29_v8 }
   0x8   :  { %v75_v18 = vrot.slane %v119_v10, %v29_v8  ;;  %v57_v19 = vrot.slane %v21_v9, %v56_v11  ;;  %v90_v20 = vrot.slane %v119_v10, %v56_v11  ;;  %v39_v21 = vrot.slane %v21_v9, %v38_v12 }
   0x9   :  { %v80_v22 = vrot.slane %v119_v10, %v38_v12 }
   0xa   :  { %v108_v48 = vld [vmem:[%s188_s3] sm:$0xf] }
   0xb   :  { %129 = vset.pattern.permute.xlu0 %v132_v3  ;;  %v104_v51 = vld [vmem:[%s189_s2] sm:$0xf] }
  0x81   :  { %v43_v13 = vpop.permute.xlu1 %42  ;;  %v25_v14 = vpop.permute.xlu0 %24 }
  0x82   :  { %v49_v23 = vmul.f32 %v48_v15, %v43_v13  ;;  %v86_v24 = vmul.f32 %v85_v16, %v43_v13  ;;  %v31_v25 = vmul.f32 %v30_v17, %v25_v14  ;;  %v76_v26 = vmul.f32 %v75_v18, %v25_v14 }
  0x86   :  { %v52_v27 = vpop.permute.xlu1 %51  ;;  %v34_v28 = vpop.permute.xlu0 %33 }
  0x87   :  { %v58_v29 = vmul.f32 %v57_v19, %v52_v27  ;;  %v91_v30 = vmul.f32 %v90_v20, %v52_v27  ;;  %v40_v31 = vmul.f32 %v39_v21, %v34_v28  ;;  %v81_v32 = vmul.f32 %v80_v22, %v34_v28 }
  0x89   :  { %v60_v33 = vadd.f32 %v58_v29, %v49_v23  ;;  %v93_v34 = vadd.f32 %v91_v30, %v86_v24  ;;  %v59_v35 = vadd.f32 %v40_v31, %v31_v25  ;;  %v92_v36 = vadd.f32 %v81_v32, %v76_v26 }
  0x8b   :  { %v61_v37 = vadd.f32 %v60_v33, %v59_v35  ;;  %v94_v38 = vadd.f32 %v93_v34, %v92_v36 }
  0x8d   :  { %v63_v39 = vsel %vm62_vm0, %v61_v37, 0.0  ;;  %v66_v40 = vmul.f32 %v61_v37, %v61_v37  ;;  %v98_v41 = vmul.f32 %v94_v38, %v94_v38  ;;  %v95_v44 = vsel %vm62_vm0, %v94_v38, 0.0 }
  0x8e   :  { %64 = vadd.xlane.f32.xlu1 %v63_v39 }
  0x8f   :  { %v67_v42 = vsel %vm62_vm0, %v66_v40, 0.0  ;;  %v99_v43 = vsel %vm62_vm0, %v98_v41, 0.0 }
  0x90   :  { %68 = vadd.xlane.f32.xlu0 %v67_v42 }
  0x92   :  { %100 = vadd.xlane.f32.xlu1 %v99_v43 }
  0x94   :  { %96 = vadd.xlane.f32.xlu0 %v95_v44 }
 0x11b   :  { %v65_v46 = vpop.xlane.xlu1 %64 }
 0x11d   :  { %v69_v47 = vpop.xlane.xlu0 %68 }
 0x11f   :  { %v101_v49 = vpop.xlane.xlu1 %100 }
 0x120   :  { %v103_v50 = vadd.f32 %v101_v49, %v69_v47 }
 0x121   :  { %v97_v52 = vpop.xlane.xlu0 %96 }
 0x122   :  { %v109_v53 = vadd.f32 %v108_v48, %v103_v50  ;;  %v102_v54 = vadd.f32 %v97_v52, %v65_v46 }
 0x124   :  { %110 = vst.msk [vmem:[%s188_s3] sm:$0xf] %vm17_vm1, %v109_v53  ;;  %v105_v55 = vadd.f32 %v104_v51, %v102_v54 }
 0x126   :  { %107 = vst.msk [vmem:[%s189_s2] sm:$0xf] %vm17_vm1, %v105_v55 }

// kernel: residue_module_forward.5
= control target key start
LH: loop header
LB: loop body
LE: loop exit
PB: predicated region body
PF: predicated region fallthrough
CT: control target
= control target key end

     0   :  { %v259_v1 = vmov 2   ;;  %v260_v2 = vmov 0   ;;  %s356_s0 = inlined_call_operand.vmem [shape: f32[2,4,16], index: 0, kind: input, shape index: {}]   ;;  %s357_s1 = inlined_call_operand.vmem [shape: f32[4,4], index: 1, kind: input, shape index: {}]   ;;  %s358_s2 = inlined_call_operand.vmem [shape: f32[4,1], index: 2, kind: input, shape index: {}]   ;;  %s359_s3 = inlined_call_operand.vmem [shape: f32[4,1], index: 3, kind: input, shape index: {}]   ;;  %s360_s4 = inlined_call_operand.vmem [shape: f32[4,4], index: 4, kind: input, shape index: {}]   ;;  %s361_s5 = inlined_call_operand.vmem [shape: f32[4,1], index: 5, kind: input, shape index: {}]   ;;  %s362_s6 = inlined_call_operand.vmem [shape: f32[4,1], index: 6, kind: input, shape index: {}]   ;;  %s363_s7 = inlined_call_operand.hbm [shape: f32[2,4,16], index: 7, kind: output, shape index: {}]  }
   0x1   :  { %v27_v0 = vld [vmem:[%s357_s1] sm:$0xf]  ;;  %226 = vset.pattern.permute.xlu1 %v259_v1  ;;  %224 = vset.pattern.permute.xlu0 %v260_v2 }
   0x2   :  { %54 = vperm.xlu1 %226, %v27_v0   ;;  %36 = vperm.xlu0 %224, %v27_v0  }
   0x3   :  { %12 = vsyncpa [#allocation3], 0  ;;  %v261_v3 = vmov 3   ;;  %v262_v4 = vmov 1   ;;  %v29_v5 = vld [vmem:[%s358_s2] sm:$0xf]  ;;  %v39_v10 = vlaneseq }
   0x4   :  { %v30_v6 = vld [vmem:[%s359_s3] sm:$0xf]  ;;  %v332_v15 = vld [vmem:[%s356_s0 + $0x4] sm:$0xf]  ;;  %vm141_vm0 = vcmask 125952  }
   0x5   :  { %v28_v7 = vld [vmem:[%s360_s4] sm:$0xf]  ;;  %v40_v11 = vshrl.u32 %v39_v10, 7 }
   0x6   :  { %227 = vset.pattern.permute.xlu1 %v261_v3  ;;  %225 = vset.pattern.permute.xlu0 %v262_v4  ;;  %v32_v8 = vld [vmem:[%s362_s6] sm:$0xf] }
   0x7   :  { %63 = vperm.xlu1 %227, %v27_v0   ;;  %45 = vperm.xlu0 %225, %v27_v0   ;;  %v31_v9 = vld [vmem:[%s361_s5] sm:$0xf]  ;;  %v41_v12 = vsub.s32 0, %v40_v11  ;;  %v59_v13 = vsub.s32 2, %v40_v11  ;;  %v68_v16 = vsub.s32 3, %v40_v11  ;;  %v50_v17 = vsub.s32 1, %v40_v11 }
   0x8   :  { %v327_v14 = vld [vmem:[%s356_s0] sm:$0xf]  ;;  %s263_s0 = smov [#allocation2]  }
   0x9   :  { %v42_v19 = vrot.slane %v327_v14, %v41_v12  ;;  %v148_v20 = vrot.slane %v332_v15, %v41_v12  ;;  %v60_v22 = vrot.slane %v327_v14, %v59_v13  ;;  %v158_v23 = vrot.slane %v332_v15, %v59_v13  ;;  %s205_s5 = sshll.u32 %s263_s0, 4  ;;  %s206_s5 = int_to_ptr.vmem [resolvable:$true] %s205_s5 }
   0xa   :  { %v69_v24 = vrot.slane %v327_v14, %v68_v16  ;;  %v163_v25 = vrot.slane %v332_v15, %v68_v16  ;;  %v51_v26 = vrot.slane %v327_v14, %v50_v17  ;;  %v153_v27 = vrot.slane %v332_v15, %v50_v17  ;;  %s235_s12 = scalar_lea.vmem %s206_s5, 128  ;;  %p240_p1 = scmp.lt.s32.totalorder %s206_s5, %s206_s5 }
   0xb   :  { %228 = vset.pattern.permute.xlu1 %v260_v2  ;;  %229 = vset.pattern.permute.xlu0 %v260_v2  ;;  %p236_p0 = scmp.ne.s32.totalorder %s206_s5, %s235_s12  ;;  %p241_p2 = scmp.lt.s32.totalorder %s235_s12, %s235_s12 }
   0xc   :  { %76 = vperm.xlu1 %228, %v29_v5   ;;  %82 = vperm.xlu0 %229, %v30_v6  }
   0xd   :  { %p242_p3 = por %p241_p2, %p240_p1 }
   0xf   :  { %p243_p4 = pnand %p242_p3, %p236_p0 }
  0x10   :  { %89 = vperm.xlu1 %228, %v28_v7   ;;  %231 = vset.pattern.permute.xlu0 %v259_v1 }
  0x11   :  { %107 = vperm.xlu0 %231, %v28_v7  }
  0x14   :  { %230 = vset.pattern.permute.xlu1 %v262_v4 }
  0x15   :  { %98 = vperm.xlu1 %230, %v28_v7   ;;  %234 = vset.pattern.permute.xlu0 %v260_v2 }
  0x16   :  { %135 = vperm.xlu0 %234, %v32_v8  }
  0x19   :  { %232 = vset.pattern.permute.xlu1 %v261_v3 }
  0x1a   :  { %116 = vperm.xlu1 %232, %v28_v7  }
  0x1e   :  { %233 = vset.pattern.permute.xlu1 %v260_v2 }
  0x1f   :  { %129 = vperm.xlu1 %233, %v31_v9  }
  0x81   :  { %v55_v18 = vpop.permute.xlu1 %54  ;;  %v37_v21 = vpop.permute.xlu0 %36 }
  0x82   :  { %v43_v28 = vmul.f32 %v42_v19, %v37_v21  ;;  %v149_v29 = vmul.f32 %v148_v20, %v37_v21  ;;  %v61_v30 = vmul.f32 %v60_v22, %v55_v18  ;;  %v159_v31 = vmul.f32 %v158_v23, %v55_v18 }
  0x86   :  { %v64_v32 = vpop.permute.xlu1 %63  ;;  %v46_v33 = vpop.permute.xlu0 %45 }
  0x87   :  { %v70_v34 = vmul.f32 %v69_v24, %v64_v32  ;;  %v164_v35 = vmul.f32 %v163_v25, %v64_v32  ;;  %v52_v36 = vmul.f32 %v51_v26, %v46_v33  ;;  %v154_v37 = vmul.f32 %v153_v27, %v46_v33 }
  0x89   :  { %v72_v38 = vadd.f32 %v70_v34, %v61_v30  ;;  %v166_v39 = vadd.f32 %v164_v35, %v159_v31  ;;  %v71_v40 = vadd.f32 %v52_v36, %v43_v28  ;;  %v165_v41 = vadd.f32 %v154_v37, %v149_v29 }
  0x8b   :  { %v77_v42 = vpop.permute.xlu1 %76  ;;  %v73_v43 = vadd.f32 %v72_v38, %v71_v40  ;;  %v167_v44 = vadd.f32 %v166_v39, %v165_v41  ;;  %v83_v45 = vpop.permute.xlu0 %82 }
  0x8d   :  { %v79_v46 = vmul.f32 %v77_v42, %v73_v43  ;;  %v168_v47 = vmul.f32 %v167_v44, %v77_v42 }
  0x8f   :  { %v85_v48 = vadd.f32 %v83_v45, %v79_v46  ;;  %v169_v49 = vadd.f32 %v168_v47, %v83_v45  ;;  %v90_v50 = vpop.permute.xlu1 %89 }
  0x90   :  { %v108_v60 = vpop.permute.xlu0 %107 }
  0x91   :  { %v86_v51 = vmax.f32 %v85_v48, 0.0  ;;  %v170_v52 = vmax.f32 %v169_v49, 0.0 }
  0x93   :  { %v95_v53 = vrot.slane %v86_v51, %v41_v12  ;;  %v174_v54 = vrot.slane %v170_v52, %v41_v12  ;;  %v104_v56 = vrot.slane %v86_v51, %v50_v17  ;;  %v179_v57 = vrot.slane %v170_v52, %v50_v17 }
  0x94   :  { %v99_v55 = vpop.permute.xlu1 %98  ;;  %v113_v58 = vrot.slane %v86_v51, %v59_v13  ;;  %v184_v59 = vrot.slane %v170_v52, %v59_v13  ;;  %v122_v61 = vrot.slane %v86_v51, %v68_v16  ;;  %v189_v62 = vrot.slane %v170_v52, %v68_v16 }
  0x95   :  { %v96_v63 = vmul.f32 %v95_v53, %v90_v50  ;;  %v175_v0 = vmul.f32 %v174_v54, %v90_v50  ;;  %v105_v1 = vmul.f32 %v104_v56, %v99_v55  ;;  %v180_v2 = vmul.f32 %v179_v57, %v99_v55  ;;  %v136_v13 = vpop.permute.xlu0 %135 }
  0x96   :  { %v114_v4 = vmul.f32 %v113_v58, %v108_v60  ;;  %v185_v5 = vmul.f32 %v184_v59, %v108_v60 }
  0x97   :  { %v124_v8 = vadd.f32 %v105_v1, %v96_v63  ;;  %v191_v9 = vadd.f32 %v180_v2, %v175_v0 }
  0x99   :  { %v117_v3 = vpop.permute.xlu1 %116 }
  0x9a   :  { %v123_v6 = vmul.f32 %v122_v61, %v117_v3  ;;  %v190_v7 = vmul.f32 %v189_v62, %v117_v3 }
  0x9c   :  { %v125_v10 = vadd.f32 %v123_v6, %v114_v4  ;;  %v192_v11 = vadd.f32 %v190_v7, %v185_v5 }
  0x9e   :  { %v130_v12 = vpop.permute.xlu1 %129  ;;  %v126_v17 = vadd.f32 %v125_v10, %v124_v8  ;;  %v193_v18 = vadd.f32 %v192_v11, %v191_v9 }
  0xa0   :  { %v132_v19 = vmul.f32 %v130_v12, %v126_v17  ;;  %v194_v20 = vmul.f32 %v193_v18, %v130_v12 }
  0xa2   :  { %v138_v16 = vadd.f32 %v136_v13, %v132_v19  ;;  %v195_v21 = vadd.f32 %v194_v20, %v136_v13 }
  0xa4   :  { %v139_v22 = vmax.f32 %v138_v16, 0.0  ;;  %v196_v23 = vmax.f32 %v195_v21, 0.0 }
  0xa6   :  { %v140_v24 = vadd.f32 %v139_v22, %v327_v14  ;;  %v197_v25 = vadd.f32 %v332_v15, %v196_v23 }
  0xa8   :  { %142 = vst.msk [vmem:[#allocation2] sm:$0xf] %vm141_vm0, %v140_v24  ;;  %199 = vst.msk [vmem:[#allocation2 + $0x4] sm:$0xf] %vm141_vm0, %v197_v25 }
  0xa9   :  { %246 = shalt.err (!%p243_p4)
}
  0xaa   :  { %s247_s15 = scalar_lea.hbm %s363_s7, 128 }
  0xab   :  { %p248_p5 = scmp.ne.s32.totalorder %s363_s7, %s247_s15  ;;  %p251_p6 = scmp.lt.u32.totalorder %s247_s15, %s363_s7 }
  0xad   :  { %p253_p7 = pnand %p251_p6, %p248_p5 }
  0xaf   :  { %256 = shalt.err (!%p253_p7)
}
  0xb0   :  { %s264_s20 = smov 64   ;;  %s265_s21 = smov 4  }
  0xb1   :  { %211 = dma.vmem_to_hbm [thread:$0]  %s206_s5, 128, %s363_s7, [#allocation3], %s264_s20, %s264_s20, %s265_s21  }
  0xb2   :  { %257 = dma.done.wait [#allocation3], 128  }
  0xb3   :  { %258 = vsyncadd [#allocation3], 4294967168 }
  0xb4   :  { %215 = vsyncpa [#allocation3], 1 }

// kernel: residue_module_forward.4
= control target key start
LH: loop header
LB: loop body
LE: loop exit
PB: predicated region body
PF: predicated region fallthrough
CT: control target
= control target key end

     0   :  { %v226_v0 = vmov 2   ;;  %v227_v1 = vmov 0   ;;  %v228_v3 = vmov 3   ;;  %v229_v4 = vmov 1   ;;  %s306_s1 = inlined_call_operand.vmem [shape: f32[4,4], index: 1, kind: input, shape index: {}]   ;;  %s307_s2 = inlined_call_operand.vmem [shape: f32[4,1], index: 2, kind: input, shape index: {}]   ;;  %s308_s3 = inlined_call_operand.vmem [shape: f32[4,1], index: 3, kind: input, shape index: {}]   ;;  %s309_s4 = inlined_call_operand.vmem [shape: f32[4,4], index: 4, kind: input, shape index: {}]   ;;  %s310_s0 = inlined_call_operand.vmem [shape: f32[2,4,16], index: 0, kind: input, shape index: {}]   ;;  %s311_s6 = inlined_call_operand.vmem [shape: f32[1,4,1], index: 6, kind: output, shape index: {1}]   ;;  %s312_s5 = inlined_call_operand.vmem [shape: f32[1,4,1], index: 5, kind: output, shape index: {0}]  }
   0x1   :  { %218 = vset.pattern.permute.xlu1 %v226_v0  ;;  %216 = vset.pattern.permute.xlu0 %v227_v1  ;;  %v29_v2 = vld [vmem:[%s306_s1] sm:$0xf]  ;;  %v39_v8 = vlaneseq  ;;  %v210_v13 = vld [vmem:[%s310_s0 + $0x4] sm:$0xf]  ;;  %vm127_vm0 = vcmask 125952   ;;  %vm26_vm1 = vcmask 3072  }
   0x2   :  { %54 = vperm.xlu1 %218, %v29_v2   ;;  %36 = vperm.xlu0 %216, %v29_v2   ;;  %v31_v5 = vld [vmem:[%s307_s2] sm:$0xf] }
   0x3   :  { %v32_v6 = vld [vmem:[%s308_s3] sm:$0xf]  ;;  %v40_v9 = vshrl.u32 %v39_v8, 7 }
   0x4   :  { %v30_v7 = vld [vmem:[%s309_s4] sm:$0xf] }
   0x5   :  { %v41_v10 = vsub.s32 0, %v40_v9  ;;  %v59_v11 = vsub.s32 2, %v40_v9  ;;  %v33_v12 = vld [vmem:[%s310_s0] sm:$0xf]  ;;  %v68_v14 = vsub.s32 3, %v40_v9  ;;  %v50_v15 = vsub.s32 1, %v40_v9 }
   0x6   :  { %219 = vset.pattern.permute.xlu1 %v228_v3  ;;  %217 = vset.pattern.permute.xlu0 %v229_v4 }
   0x7   :  { %63 = vperm.xlu1 %219, %v29_v2   ;;  %45 = vperm.xlu0 %217, %v29_v2   ;;  %v42_v18 = vrot.slane %v33_v12, %v41_v10  ;;  %v140_v19 = vrot.slane %v210_v13, %v41_v10  ;;  %v60_v20 = vrot.slane %v33_v12, %v59_v11 }
   0x8   :  { %v150_v21 = vrot.slane %v210_v13, %v59_v11  ;;  %v69_v22 = vrot.slane %v33_v12, %v68_v14  ;;  %v155_v23 = vrot.slane %v210_v13, %v68_v14  ;;  %v51_v24 = vrot.slane %v33_v12, %v50_v15 }
   0x9   :  { %v145_v25 = vrot.slane %v210_v13, %v50_v15 }
   0xb   :  { %220 = vset.pattern.permute.xlu1 %v227_v1  ;;  %221 = vset.pattern.permute.xlu0 %v227_v1 }
   0xc   :  { %76 = vperm.xlu1 %220, %v31_v5   ;;  %82 = vperm.xlu0 %221, %v32_v6  }
  0x10   :  { %89 = vperm.xlu1 %220, %v30_v7   ;;  %223 = vset.pattern.permute.xlu0 %v226_v0 }
  0x11   :  { %107 = vperm.xlu0 %223, %v30_v7  }
  0x14   :  { %222 = vset.pattern.permute.xlu1 %v229_v4 }
  0x15   :  { %98 = vperm.xlu1 %222, %v30_v7   ;;  %225 = vset.pattern.permute.xlu0 %v228_v3 }
  0x19   :  { %224 = vset.pattern.permute.xlu1 %v228_v3 }
  0x1a   :  { %116 = vperm.xlu1 %224, %v30_v7  }
  0x81   :  { %v55_v16 = vpop.permute.xlu1 %54  ;;  %v37_v17 = vpop.permute.xlu0 %36 }
  0x82   :  { %v43_v26 = vmul.f32 %v42_v18, %v37_v17  ;;  %v141_v27 = vmul.f32 %v140_v19, %v37_v17  ;;  %v61_v28 = vmul.f32 %v60_v20, %v55_v16  ;;  %v151_v29 = vmul.f32 %v150_v21, %v55_v16 }
  0x83   :  { %v230_v18 = vmov 0.0  }
  0x84   :  { %28 = vst.msk [vmem:[%s311_s6] sm:$0xf] %vm26_vm1, %v230_v18  ;;  %27 = vst.msk [vmem:[%s312_s5] sm:$0xf] %vm26_vm1, %v230_v18 }
  0x86   :  { %v64_v30 = vpop.permute.xlu1 %63  ;;  %v46_v31 = vpop.permute.xlu0 %45 }
  0x87   :  { %v70_v32 = vmul.f32 %v69_v22, %v64_v30  ;;  %v156_v33 = vmul.f32 %v155_v23, %v64_v30  ;;  %v52_v34 = vmul.f32 %v51_v24, %v46_v31  ;;  %v146_v35 = vmul.f32 %v145_v25, %v46_v31 }
  0x89   :  { %v72_v36 = vadd.f32 %v70_v32, %v61_v28  ;;  %v158_v37 = vadd.f32 %v156_v33, %v151_v29  ;;  %v71_v38 = vadd.f32 %v52_v34, %v43_v26  ;;  %v157_v39 = vadd.f32 %v146_v35, %v141_v27 }
  0x8b   :  { %v77_v40 = vpop.permute.xlu1 %76  ;;  %v73_v41 = vadd.f32 %v72_v36, %v71_v38  ;;  %v159_v42 = vadd.f32 %v158_v37, %v157_v39  ;;  %v83_v43 = vpop.permute.xlu0 %82  ;;  %v199_v21 = vld [vmem:[%s311_s6] sm:$0xf] }
  0x8c   :  { %v195_v24 = vld [vmem:[%s312_s5] sm:$0xf] }
  0x8d   :  { %v79_v44 = vmul.f32 %v77_v40, %v73_v41  ;;  %v160_v45 = vmul.f32 %v159_v42, %v77_v40 }
  0x8f   :  { %v85_v46 = vadd.f32 %v83_v43, %v79_v44  ;;  %v161_v47 = vadd.f32 %v160_v45, %v83_v43  ;;  %v90_v48 = vpop.permute.xlu1 %89 }
  0x90   :  { %v108_v58 = vpop.permute.xlu0 %107 }
  0x91   :  { %v86_v49 = vmax.f32 %v85_v46, 0.0  ;;  %v162_v50 = vmax.f32 %v161_v47, 0.0 }
  0x93   :  { %v95_v51 = vrot.slane %v86_v49, %v41_v10  ;;  %v166_v52 = vrot.slane %v162_v50, %v41_v10  ;;  %v104_v54 = vrot.slane %v86_v49, %v50_v15  ;;  %v171_v55 = vrot.slane %v162_v50, %v50_v15 }
  0x94   :  { %v99_v53 = vpop.permute.xlu1 %98  ;;  %v113_v56 = vrot.slane %v86_v49, %v59_v11  ;;  %v176_v57 = vrot.slane %v162_v50, %v59_v11  ;;  %v122_v59 = vrot.slane %v86_v49, %v68_v14  ;;  %v181_v60 = vrot.slane %v162_v50, %v68_v14 }
  0x95   :  { %v96_v61 = vmul.f32 %v95_v51, %v90_v48  ;;  %v167_v62 = vmul.f32 %v166_v52, %v90_v48  ;;  %v105_v63 = vmul.f32 %v104_v54, %v99_v53  ;;  %v172_v0 = vmul.f32 %v171_v55, %v99_v53 }
  0x96   :  { %v114_v2 = vmul.f32 %v113_v56, %v108_v58  ;;  %v177_v3 = vmul.f32 %v176_v57, %v108_v58 }
  0x97   :  { %v124_v6 = vadd.f32 %v105_v63, %v96_v61  ;;  %v183_v7 = vadd.f32 %v172_v0, %v167_v62 }
  0x99   :  { %v117_v1 = vpop.permute.xlu1 %116 }
  0x9a   :  { %v123_v4 = vmul.f32 %v122_v59, %v117_v1  ;;  %v182_v5 = vmul.f32 %v181_v60, %v117_v1 }
  0x9c   :  { %v125_v8 = vadd.f32 %v123_v4, %v114_v2  ;;  %v184_v9 = vadd.f32 %v182_v5, %v177_v3 }
  0x9e   :  { %v126_v10 = vadd.f32 %v125_v8, %v124_v6  ;;  %v185_v12 = vadd.f32 %v184_v9, %v183_v7 }
  0xa0   :  { %v128_v11 = vsel %vm127_vm0, %v126_v10, 0.0  ;;  %v131_v13 = vmul.f32 %v126_v10, %v126_v10  ;;  %v189_v15 = vmul.f32 %v185_v12, %v185_v12  ;;  %v186_v17 = vsel %vm127_vm0, %v185_v12, 0.0 }
  0xa1   :  { %129 = vadd.xlane.f32.xlu1 %v128_v11 }
  0xa2   :  { %v132_v14 = vsel %vm127_vm0, %v131_v13, 0.0  ;;  %v190_v16 = vsel %vm127_vm0, %v189_v15, 0.0 }
  0xa3   :  { %133 = vadd.xlane.f32.xlu0 %v132_v14 }
  0xa5   :  { %191 = vadd.xlane.f32.xlu1 %v190_v16 }
  0xa7   :  { %187 = vadd.xlane.f32.xlu0 %v186_v17 }
 0x12e   :  { %v130_v19 = vpop.xlane.xlu1 %129 }
 0x130   :  { %v134_v20 = vpop.xlane.xlu0 %133 }
 0x132   :  { %v192_v22 = vpop.xlane.xlu1 %191 }
 0x133   :  { %v194_v23 = vadd.f32 %v192_v22, %v134_v20 }
 0x134   :  { %v188_v25 = vpop.xlane.xlu0 %187 }
 0x135   :  { %v200_v26 = vadd.f32 %v199_v21, %v194_v23  ;;  %v193_v27 = vadd.f32 %v188_v25, %v130_v19 }
 0x137   :  { %201 = vst.msk [vmem:[%s311_s6] sm:$0xf] %vm26_vm1, %v200_v26  ;;  %v196_v28 = vadd.f32 %v195_v24, %v193_v27 }
 0x139   :  { %198 = vst.msk [vmem:[%s312_s5] sm:$0xf] %vm26_vm1, %v196_v28 }

</bundles_post_ra>
